<compile_context>
chip_gen: v5e
topology: v5e:2x2
jax: 0.10.0
libtpu: 0.0.40
codegen_flags: <defaults>
</compile_context>

<pallas_src>
import functools

import jax
import jax.numpy as jnp
from jax.experimental import pallas as pl
from jax.experimental.pallas import tpu as pltpu


def _wce_kernel(x_ref, t_ref, w_ref, loss_ref, wsum_ref, acc_num, acc_den,
                *, ignore_index, hw):
    # x_ref : (N, C, R, 128) logits (input dtype)   t_ref : (N, 1, R, 128) int32
    # w_ref : (C,) f32 class weights in SMEM
    # loss_ref / wsum_ref : (1, 128) per-split partial outputs
    # acc_num / acc_den   : (R, 128) f32 lane/sublane-dense accumulators
    s = pl.program_id(0)            # split axis ("parallel")
    i = pl.program_id(1)            # pixel-row tiles within split ("arbitrary")

    @pl.when(i == 0)
    def _():
        acc_num[...] = jnp.zeros_like(acc_num)
        acc_den[...] = jnp.zeros_like(acc_den)

    num_classes = x_ref.shape[1]
    tile_rows = t_ref.shape[2]

    t = t_ref[:, 0]                                        # (N, R, 128) int32

    # ---- pass 1: class max + pick x[y] and w[y] via dense scalar-vs-target selects
    xc = x_ref[:, 0].astype(jnp.float32)                   # (N, R, 128) f32
    sel = t == 0
    m = xc
    x_pick = jnp.where(sel, xc, 0.0)
    w_pick = jnp.where(sel, w_ref[0], 0.0)
    for c in range(1, num_classes):
        xc = x_ref[:, c].astype(jnp.float32)
        sel = t == c
        m = jnp.maximum(m, xc)
        x_pick = jnp.where(sel, xc, x_pick)
        w_pick = jnp.where(sel, w_ref[c], w_pick)

    # ---- pass 2: numerically stable exp-sum over classes
    ssum = jnp.zeros_like(m)
    for c in range(num_classes):
        ssum += jnp.exp(x_ref[:, c].astype(jnp.float32) - m)
    lse = jnp.log(ssum) + m                                # (N, R, 128)

    # ---- ignore_index + ragged-tail mask (jnp.where on the contribution)
    row = jax.lax.broadcasted_iota(jnp.int32, (tile_rows, 128), 0)
    lane = jax.lax.broadcasted_iota(jnp.int32, (tile_rows, 128), 1)
    block = s * pl.num_programs(1) + i
    pix = (block * tile_rows + row) * 128 + lane           # global pixel index
    valid = (t != ignore_index) & (pix < hw)               # (N, R, 128) bool

    contrib = w_pick * (lse - x_pick)                      # w[y] * (lse - x[y])
    acc_num[...] += jnp.sum(jnp.where(valid, contrib, 0.0), axis=0)   # (R, 128)
    acc_den[...] += jnp.sum(jnp.where(valid, w_pick, 0.0), axis=0)    # (R, 128)

    @pl.when(i == pl.num_programs(1) - 1)
    def _():
        loss_ref[...] = jnp.full(loss_ref.shape, jnp.sum(acc_num[...]), jnp.float32)
        wsum_ref[...] = jnp.full(wsum_ref.shape, jnp.sum(acc_den[...]), jnp.float32)


def _chip_defaults():
    kind = ""
    try:
        kind = jax.devices()[0].device_kind.lower()
    except Exception:
        pass
    if "v7" in kind:
        # v7x: 2 TCs, 64 MiB VMEM, ~3.2 TB/s HBM -> smaller steps, 2-way split
        return {"target_bytes": int(2.5 * 2**20),
                "vmem_limit": 48 * 2**20,
                "num_splits": 2}
    # v5e / v6e: single TC, 128 MiB VMEM -> bigger steps, no split
    return {"target_bytes": int(3.5 * 2**20),
            "vmem_limit": 80 * 2**20,
            "num_splits": 1}


def weighted_cross_entropy_loss(logits, targets, weights=None, ignore_index=-1,
                                tile_rows=None, num_splits=None):
    """logits: (N, C, H, W) float; targets: (N, H, W) int. Returns scalar f32 loss."""
    N, C, H, W = logits.shape
    HW = H * W
    itemsize = jnp.dtype(logits.dtype).itemsize
    cfg = _chip_defaults()

    # Pixel axis -> (rows, 128). Free reshape when HW % 128 == 0.
    HW_pad = ((HW + 127) // 128) * 128
    rows = HW_pad // 128

    x = logits.reshape(N, C, HW)
    t = targets.reshape(N, 1, HW).astype(jnp.int32)
    if HW_pad != HW:
        # TODO(synk): this <128-pixel pad copies the logits once; a ragged last-dim
        # layout would avoid it at the cost of sublane density.
        x = jnp.pad(x, ((0, 0), (0, 0), (0, HW_pad - HW)))
        t = jnp.pad(t, ((0, 0), (0, 0), (0, HW_pad - HW)),
                    constant_values=ignore_index)
    x = x.reshape(N, C, rows, 128)
    t = t.reshape(N, 1, rows, 128)

    # Step sizing: ~target_bytes of logits per grid step, rows multiple of 8
    # (or the full row count), handled raggedly at the end via in-kernel masking.
    if tile_rows is None:
        bytes_per_row = N * C * 128 * itemsize
        tile_rows = max(8, (cfg["target_bytes"] // max(1, bytes_per_row)) // 8 * 8)
    if tile_rows >= rows:
        tile_rows = rows
    num_tiles = -(-rows // tile_rows)
    if num_splits is None:
        num_splits = cfg["num_splits"]
    num_splits = max(1, min(num_splits, num_tiles))
    tiles_per_split = -(-num_tiles // num_splits)
    last_block = num_tiles - 1

    if weights is None:
        w = jnp.ones((C,), jnp.float32)
    else:
        w = jnp.asarray(weights, jnp.float32).reshape(C)

    kernel = functools.partial(_wce_kernel, ignore_index=int(ignore_index), hw=HW)

    def data_idx(s, i):
        # clamp the (rare) duplicated last step onto the last real tile; its
        # contribution is zeroed in-kernel by the global-pixel-index mask.
        return (0, 0, jnp.minimum(s * tiles_per_split + i, last_block), 0)

    loss_out, wsum_out = pl.pallas_call(
        kernel,
        out_shape=(
            jax.ShapeDtypeStruct((1, 128 * num_splits), jnp.float32),
            jax.ShapeDtypeStruct((1, 128 * num_splits), jnp.float32),
        ),
        grid=(num_splits, tiles_per_split),
        in_specs=[
            pl.BlockSpec((N, C, tile_rows, 128), data_idx),
            pl.BlockSpec((N, 1, tile_rows, 128), data_idx),
            pl.BlockSpec(memory_space=pltpu.MemorySpace.SMEM),
        ],
        out_specs=[
            pl.BlockSpec((1, 128), lambda s, i: (0, s)),
            pl.BlockSpec((1, 128), lambda s, i: (0, s)),
        ],
        scratch_shapes=[
            pltpu.VMEM((tile_rows, 128), jnp.float32),
            pltpu.VMEM((tile_rows, 128), jnp.float32),
        ],
        compiler_params=pltpu.CompilerParams(
            dimension_semantics=("parallel", "arbitrary"),
            vmem_limit_bytes=cfg["vmem_limit"],
        ),
    )(x, t, w)

    # combine per-split partials (lane 0 of each (1,128) partial block)
    loss_sum = loss_out.reshape(num_splits, 128)[:, 0].sum()
    w_sum = wsum_out.reshape(num_splits, 128)[:, 0].sum()
    return loss_sum / w_sum


def _reference_loss(logits, targets, weights, ignore_index=-1):
    # pure-JAX reference mirroring torch.nn.CrossEntropyLoss(weight, ignore_index)
    N, C, H, W = logits.shape
    x = jnp.transpose(logits, (0, 2, 3, 1)).reshape(-1, C).astype(jnp.float32)
    t = targets.reshape(-1).astype(jnp.int32)
    w = jnp.ones((C,), jnp.float32) if weights is None else jnp.asarray(weights, jnp.float32)
    valid = t != ignore_index
    t_safe = jnp.where(valid, t, 0)
    logp = jax.nn.log_softmax(x, axis=-1)
    nll = -jnp.take_along_axis(logp, t_safe[:, None], axis=1)[:, 0]
    wp = w[t_safe]
    num = jnp.sum(nll * wp * valid)
    den = jnp.sum(wp * valid)
    return num / den


if __name__ == "__main__":
    key = jax.random.PRNGKey(0)
    k1, k2, k3 = jax.random.split(key, 3)

    N, C, H, W = 2, 4, 16, 16
    logits = jax.random.normal(k1, (N, C, H, W), dtype=jnp.float32)
    targets = jax.random.randint(k2, (N, H, W), 0, C, dtype=jnp.int32)
    # sprinkle some ignore_index pixels
    ignore_mask = jax.random.uniform(k3, (N, H, W)) < 0.1
    targets = jnp.where(ignore_mask, -1, targets)
    class_weights = jnp.array([1.0, 2.0, 0.5, 1.5], dtype=jnp.float32)

    loss = weighted_cross_entropy_loss(logits, targets, weights=class_weights,
                                       ignore_index=-1)
    loss = jax.block_until_ready(loss)

    ref = _reference_loss(logits, targets, class_weights, ignore_index=-1)
    assert jnp.allclose(loss, ref, rtol=1e-5, atol=1e-5), (loss, ref)

    print("KERNEL_OK")
</pallas_src>

<mosaic_0001>
module attributes {stable_mosaic.version = 11 : i64} {
  func.func @_wce_kernel(%arg0: i32, %arg1: i32, %arg2: memref<2x4x2x128xf32, #tpu.memory_space<vmem>>, %arg3: memref<2x1x2x128xi32, #tpu.memory_space<vmem>>, %arg4: memref<4xf32, #tpu.memory_space<smem>>, %arg5: memref<1x128xf32, #tpu.memory_space<vmem>>, %arg6: memref<1x128xf32, #tpu.memory_space<vmem>>, %arg7: memref<2x128xf32, #tpu.memory_space<vmem>>, %arg8: memref<2x128xf32, #tpu.memory_space<vmem>>) attributes {dimension_semantics = [#tpu.dimension_semantics<parallel>, #tpu.dimension_semantics<arbitrary>], iteration_bounds = array<i64: 1, 1>, scalar_prefetch = 0 : i64, scratch_operands = 2 : i64, tpu.core_type = #tpu.core_type<tc>, window_params = [{transform_indices = @transform_0, window_bounds = array<i64: 2, 4, 2, 128>}, {transform_indices = @transform_1, window_bounds = array<i64: 2, 1, 2, 128>}, {transform_indices = @transform_2, window_bounds = array<i64: 4>}, {transform_indices = @transform_3, window_bounds = array<i64: 1, 128>}, {transform_indices = @transform_4, window_bounds = array<i64: 1, 128>}]} {
    %c0_i32 = arith.constant 0 : i32
    %0 = arith.cmpi eq, %arg1, %c0_i32 : i32
    %1 = arith.extui %0 : i1 to i32
    %c0_i32_0 = arith.constant 0 : i32
    %2 = arith.cmpi ne, %1, %c0_i32_0 : i32
    scf.if %2 {
      %cst_56 = arith.constant 0.000000e+00 : f32
      %99 = vector.broadcast %cst_56 : f32 to vector<2x128xf32>
      %c0_57 = arith.constant 0 : index
      %c0_58 = arith.constant 0 : index
      %100 = vector.load %arg7[%c0_57, %c0_58] : memref<2x128xf32, #tpu.memory_space<vmem>>, vector<2x128xf32>
      tpu.vector_store %arg7[%c0_57, %c0_58], %99 {strides = array<i32>} : memref<2x128xf32, #tpu.memory_space<vmem>>, vector<2x128xf32>,
      %cst_59 = arith.constant 0.000000e+00 : f32
      %101 = vector.broadcast %cst_59 : f32 to vector<2x128xf32>
      %c0_60 = arith.constant 0 : index
      %c0_61 = arith.constant 0 : index
      %102 = vector.load %arg8[%c0_60, %c0_61] : memref<2x128xf32, #tpu.memory_space<vmem>>, vector<2x128xf32>
      tpu.vector_store %arg8[%c0_60, %c0_61], %101 {strides = array<i32>} : memref<2x128xf32, #tpu.memory_space<vmem>>, vector<2x128xf32>,
    } else {
    }
    %c0 = arith.constant 0 : index
    %c0_1 = arith.constant 0 : index
    %c0_2 = arith.constant 0 : index
    %c0_3 = arith.constant 0 : index
    %3 = vector.load %arg3[%c0, %c0_1, %c0_2, %c0_3] : memref<2x1x2x128xi32, #tpu.memory_space<vmem>>, vector<2x1x2x128xi32>
    %4 = vector.shape_cast %3 : vector<2x1x2x128xi32> to vector<2x2x128xi32>
    %c0_4 = arith.constant 0 : index
    %c0_5 = arith.constant 0 : index
    %c0_6 = arith.constant 0 : index
    %c0_7 = arith.constant 0 : index
    %5 = vector.load %arg2[%c0_4, %c0_5, %c0_6, %c0_7] : memref<2x4x2x128xf32, #tpu.memory_space<vmem>>, vector<2x1x2x128xf32>
    %6 = vector.shape_cast %5 : vector<2x1x2x128xf32> to vector<2x2x128xf32>
    %c0_i32_8 = arith.constant 0 : i32
    %7 = vector.broadcast %c0_i32_8 : i32 to vector<2x2x128xi32>
    %8 = arith.cmpi eq, %4, %7 : vector<2x2x128xi32>
    %cst = arith.constant 0.000000e+00 : f32
    %9 = vector.broadcast %cst : f32 to vector<2x2x128xf32>
    %10 = arith.select %8, %6, %9 : vector<2x2x128xi1>, vector<2x2x128xf32>
    %c0_9 = arith.constant 0 : index
    %11 = memref.load %arg4[%c0_9] : memref<4xf32, #tpu.memory_space<smem>>
    %cst_10 = arith.constant 0.000000e+00 : f32
    %12 = vector.broadcast %11 : f32 to vector<2x2x128xf32>
    %13 = vector.broadcast %cst_10 : f32 to vector<2x2x128xf32>
    %14 = arith.select %8, %12, %13 : vector<2x2x128xi1>, vector<2x2x128xf32>
    %c0_11 = arith.constant 0 : index
    %c1 = arith.constant 1 : index
    %c0_12 = arith.constant 0 : index
    %c0_13 = arith.constant 0 : index
    %15 = vector.load %arg2[%c0_11, %c1, %c0_12, %c0_13] : memref<2x4x2x128xf32, #tpu.memory_space<vmem>>, vector<2x1x2x128xf32>
    %16 = vector.shape_cast %15 : vector<2x1x2x128xf32> to vector<2x2x128xf32>
    %c1_i32 = arith.constant 1 : i32
    %17 = vector.broadcast %c1_i32 : i32 to vector<2x2x128xi32>
    %18 = arith.cmpi eq, %4, %17 : vector<2x2x128xi32>
    %19 = arith.maximumf %6, %16 : vector<2x2x128xf32>
    %20 = arith.select %18, %16, %10 : vector<2x2x128xi1>, vector<2x2x128xf32>
    %c1_14 = arith.constant 1 : index
    %21 = memref.load %arg4[%c1_14] : memref<4xf32, #tpu.memory_space<smem>>
    %22 = vector.broadcast %21 : f32 to vector<2x2x128xf32>
    %23 = arith.select %18, %22, %14 : vector<2x2x128xi1>, vector<2x2x128xf32>
    %c0_15 = arith.constant 0 : index
    %c2 = arith.constant 2 : index
    %c0_16 = arith.constant 0 : index
    %c0_17 = arith.constant 0 : index
    %24 = vector.load %arg2[%c0_15, %c2, %c0_16, %c0_17] : memref<2x4x2x128xf32, #tpu.memory_space<vmem>>, vector<2x1x2x128xf32>
    %25 = vector.shape_cast %24 : vector<2x1x2x128xf32> to vector<2x2x128xf32>
    %c2_i32 = arith.constant 2 : i32
    %26 = vector.broadcast %c2_i32 : i32 to vector<2x2x128xi32>
    %27 = arith.cmpi eq, %4, %26 : vector<2x2x128xi32>
    %28 = arith.maximumf %19, %25 : vector<2x2x128xf32>
    %29 = arith.select %27, %25, %20 : vector<2x2x128xi1>, vector<2x2x128xf32>
    %c2_18 = arith.constant 2 : index
    %30 = memref.load %arg4[%c2_18] : memref<4xf32, #tpu.memory_space<smem>>
    %31 = vector.broadcast %30 : f32 to vector<2x2x128xf32>
    %32 = arith.select %27, %31, %23 : vector<2x2x128xi1>, vector<2x2x128xf32>
    %c0_19 = arith.constant 0 : index
    %c3 = arith.constant 3 : index
    %c0_20 = arith.constant 0 : index
    %c0_21 = arith.constant 0 : index
    %33 = vector.load %arg2[%c0_19, %c3, %c0_20, %c0_21] : memref<2x4x2x128xf32, #tpu.memory_space<vmem>>, vector<2x1x2x128xf32>
    %34 = vector.shape_cast %33 : vector<2x1x2x128xf32> to vector<2x2x128xf32>
    %c3_i32 = arith.constant 3 : i32
    %35 = vector.broadcast %c3_i32 : i32 to vector<2x2x128xi32>
    %36 = arith.cmpi eq, %4, %35 : vector<2x2x128xi32>
    %37 = arith.maximumf %28, %34 : vector<2x2x128xf32>
    %38 = arith.select %36, %34, %29 : vector<2x2x128xi1>, vector<2x2x128xf32>
    %c3_22 = arith.constant 3 : index
    %39 = memref.load %arg4[%c3_22] : memref<4xf32, #tpu.memory_space<smem>>
    %40 = vector.broadcast %39 : f32 to vector<2x2x128xf32>
    %41 = arith.select %36, %40, %32 : vector<2x2x128xi1>, vector<2x2x128xf32>
    %cst_23 = arith.constant 0.000000e+00 : f32
    %42 = vector.broadcast %cst_23 : f32 to vector<2x2x128xf32>
    %c0_24 = arith.constant 0 : index
    %c0_25 = arith.constant 0 : index
    %c0_26 = arith.constant 0 : index
    %c0_27 = arith.constant 0 : index
    %43 = vector.load %arg2[%c0_24, %c0_25, %c0_26, %c0_27] : memref<2x4x2x128xf32, #tpu.memory_space<vmem>>, vector<2x1x2x128xf32>
    %44 = vector.shape_cast %43 : vector<2x1x2x128xf32> to vector<2x2x128xf32>
    %45 = arith.subf %44, %37 : vector<2x2x128xf32>
    %46 = math.exp %45 : vector<2x2x128xf32>
    %47 = arith.addf %42, %46 : vector<2x2x128xf32>
    %c0_28 = arith.constant 0 : index
    %c1_29 = arith.constant 1 : index
    %c0_30 = arith.constant 0 : index
    %c0_31 = arith.constant 0 : index
    %48 = vector.load %arg2[%c0_28, %c1_29, %c0_30, %c0_31] : memref<2x4x2x128xf32, #tpu.memory_space<vmem>>, vector<2x1x2x128xf32>
    %49 = vector.shape_cast %48 : vector<2x1x2x128xf32> to vector<2x2x128xf32>
    %50 = arith.subf %49, %37 : vector<2x2x128xf32>
    %51 = math.exp %50 : vector<2x2x128xf32>
    %52 = arith.addf %47, %51 : vector<2x2x128xf32>
    %c0_32 = arith.constant 0 : index
    %c2_33 = arith.constant 2 : index
    %c0_34 = arith.constant 0 : index
    %c0_35 = arith.constant 0 : index
    %53 = vector.load %arg2[%c0_32, %c2_33, %c0_34, %c0_35] : memref<2x4x2x128xf32, #tpu.memory_space<vmem>>, vector<2x1x2x128xf32>
    %54 = vector.shape_cast %53 : vector<2x1x2x128xf32> to vector<2x2x128xf32>
    %55 = arith.subf %54, %37 : vector<2x2x128xf32>
    %56 = math.exp %55 : vector<2x2x128xf32>
    %57 = arith.addf %52, %56 : vector<2x2x128xf32>
    %c0_36 = arith.constant 0 : index
    %c3_37 = arith.constant 3 : index
    %c0_38 = arith.constant 0 : index
    %c0_39 = arith.constant 0 : index
    %58 = vector.load %arg2[%c0_36, %c3_37, %c0_38, %c0_39] : memref<2x4x2x128xf32, #tpu.memory_space<vmem>>, vector<2x1x2x128xf32>
    %59 = vector.shape_cast %58 : vector<2x1x2x128xf32> to vector<2x2x128xf32>
    %60 = arith.subf %59, %37 : vector<2x2x128xf32>
    %61 = math.exp %60 : vector<2x2x128xf32>
    %62 = arith.addf %57, %61 : vector<2x2x128xf32>
    %63 = math.log %62 : vector<2x2x128xf32>
    %64 = arith.addf %63, %37 : vector<2x2x128xf32>
    %65 = tpu.iota {dimensions = array<i32: 0>} : vector<2x128xi32>
    %66 = tpu.iota {dimensions = array<i32: 1>} : vector<2x128xi32>
    %c1_i32_40 = arith.constant 1 : i32
    %67 = arith.muli %arg0, %c1_i32_40 : i32
    %68 = arith.addi %67, %arg1 : i32
    %c2_i32_41 = arith.constant 2 : i32
    %69 = arith.muli %68, %c2_i32_41 : i32
    %70 = vector.broadcast %69 : i32 to vector<2x128xi32>
    %71 = arith.addi %70, %65 : vector<2x128xi32>
    %c128_i32 = arith.constant 128 : i32
    %72 = vector.broadcast %c128_i32 : i32 to vector<2x128xi32>
    %73 = arith.muli %71, %72 : vector<2x128xi32>
    %74 = arith.addi %73, %66 : vector<2x128xi32>
    %c-1_i32 = arith.constant -1 : i32
    %75 = vector.broadcast %c-1_i32 : i32 to vector<2x2x128xi32>
    %76 = arith.cmpi ne, %4, %75 : vector<2x2x128xi32>
    %c256_i32 = arith.constant 256 : i32
    %77 = vector.broadcast %c256_i32 : i32 to vector<2x128xi32>
    %78 = arith.cmpi slt, %74, %77 : vector<2x128xi32>
    %79 = vector.shape_cast %78 : vector<2x128xi1> to vector<1x2x128xi1>
    %80 = vector.broadcast %79 : vector<1x2x128xi1> to vector<2x2x128xi1>
    %81 = arith.andi %76, %80 : vector<2x2x128xi1>
    %82 = arith.subf %64, %38 : vector<2x2x128xf32>
    %83 = arith.mulf %41, %82 : vector<2x2x128xf32>
    %c0_42 = arith.constant 0 : index
    %c0_43 = arith.constant 0 : index
    %84 = vector.load %arg7[%c0_42, %c0_43] : memref<2x128xf32, #tpu.memory_space<vmem>>, vector<2x128xf32>
    %cst_44 = arith.constant 0.000000e+00 : f32
    %85 = vector.broadcast %cst_44 : f32 to vector<2x2x128xf32>
    %86 = arith.select %81, %83, %85 : vector<2x2x128xi1>, vector<2x2x128xf32>
    %cst_45 = arith.constant dense<0.000000e+00> : vector<2x128xf32>
    %87 = vector.multi_reduction <add>, %86, %cst_45 [0] : vector<2x2x128xf32> to vector<2x128xf32>
    %88 = arith.addf %84, %87 : vector<2x128xf32>
    %c0_46 = arith.constant 0 : index
    %c0_47 = arith.constant 0 : index
    %89 = vector.load %arg7[%c0_46, %c0_47] : memref<2x128xf32, #tpu.memory_space<vmem>>, vector<2x128xf32>
    tpu.vector_store %arg7[%c0_46, %c0_47], %88 {strides = array<i32>} : memref<2x128xf32, #tpu.memory_space<vmem>>, vector<2x128xf32>,
    %c0_48 = arith.constant 0 : index
    %c0_49 = arith.constant 0 : index
    %90 = vector.load %arg8[%c0_48, %c0_49] : memref<2x128xf32, #tpu.memory_space<vmem>>, vector<2x128xf32>
    %cst_50 = arith.constant 0.000000e+00 : f32
    %91 = vector.broadcast %cst_50 : f32 to vector<2x2x128xf32>
    %92 = arith.select %81, %41, %91 : vector<2x2x128xi1>, vector<2x2x128xf32>
    %cst_51 = arith.constant dense<0.000000e+00> : vector<2x128xf32>
    %93 = vector.multi_reduction <add>, %92, %cst_51 [0] : vector<2x2x128xf32> to vector<2x128xf32>
    %94 = arith.addf %90, %93 : vector<2x128xf32>
    %c0_52 = arith.constant 0 : index
    %c0_53 = arith.constant 0 : index
    %95 = vector.load %arg8[%c0_52, %c0_53] : memref<2x128xf32, #tpu.memory_space<vmem>>, vector<2x128xf32>
    tpu.vector_store %arg8[%c0_52, %c0_53], %94 {strides = array<i32>} : memref<2x128xf32, #tpu.memory_space<vmem>>, vector<2x128xf32>,
    %c0_i32_54 = arith.constant 0 : i32
    %96 = arith.cmpi eq, %arg1, %c0_i32_54 : i32
    %97 = arith.extui %96 : i1 to i32
    %c0_i32_55 = arith.constant 0 : i32
    %98 = arith.cmpi ne, %97, %c0_i32_55 : i32
    scf.if %98 {
      %c0_56 = arith.constant 0 : index
      %c0_57 = arith.constant 0 : index
      %99 = vector.load %arg7[%c0_56, %c0_57] : memref<2x128xf32, #tpu.memory_space<vmem>>, vector<2x128xf32>
      %100 = vector.shape_cast %99 : vector<2x128xf32> to vector<1x2x128xf32>
      %cst_58 = arith.constant dense<0.000000e+00> : vector<1xf32>
      %101 = vector.multi_reduction <add>, %100, %cst_58 [1, 2] : vector<1x2x128xf32> to vector<1xf32>
      %102 = vector.shape_cast %101 : vector<1xf32> to vector<1x1x1xf32>
      %103 = vector.extract %102[0, 0, 0] : f32 from vector<1x1x1xf32>
      %104 = vector.broadcast %103 : f32 to vector<1x128xf32>
      %c0_59 = arith.constant 0 : index
      %c0_60 = arith.constant 0 : index
      %105 = vector.load %arg5[%c0_59, %c0_60] : memref<1x128xf32, #tpu.memory_space<vmem>>, vector<1x128xf32>
      tpu.vector_store %arg5[%c0_59, %c0_60], %104 {strides = array<i32>} : memref<1x128xf32, #tpu.memory_space<vmem>>, vector<1x128xf32>,
      %c0_61 = arith.constant 0 : index
      %c0_62 = arith.constant 0 : index
      %106 = vector.load %arg8[%c0_61, %c0_62] : memref<2x128xf32, #tpu.memory_space<vmem>>, vector<2x128xf32>
      %107 = vector.shape_cast %106 : vector<2x128xf32> to vector<1x2x128xf32>
      %cst_63 = arith.constant dense<0.000000e+00> : vector<1xf32>
      %108 = vector.multi_reduction <add>, %107, %cst_63 [1, 2] : vector<1x2x128xf32> to vector<1xf32>
      %109 = vector.shape_cast %108 : vector<1xf32> to vector<1x1x1xf32>
      %110 = vector.extract %109[0, 0, 0] : f32 from vector<1x1x1xf32>
      %111 = vector.broadcast %110 : f32 to vector<1x128xf32>
      %c0_64 = arith.constant 0 : index
      %c0_65 = arith.constant 0 : index
      %112 = vector.load %arg6[%c0_64, %c0_65] : memref<1x128xf32, #tpu.memory_space<vmem>>, vector<1x128xf32>
      tpu.vector_store %arg6[%c0_64, %c0_65], %111 {strides = array<i32>} : memref<1x128xf32, #tpu.memory_space<vmem>>, vector<1x128xf32>,
    } else {
    }
    return
  }
  func.func @transform_0(%arg0: i32, %arg1: i32) -> (i32, i32, i32, i32) {
    %c1_i32 = arith.constant 1 : i32
    %0 = arith.muli %arg0, %c1_i32 : i32
    %1 = arith.addi %0, %arg1 : i32
    %c0_i32 = arith.constant 0 : i32
    %2 = arith.minsi %1, %c0_i32 : i32
    %c0_i32_0 = arith.constant 0 : i32
    %c0_i32_1 = arith.constant 0 : i32
    %c0_i32_2 = arith.constant 0 : i32
    %c0_i32_3 = arith.constant 0 : i32
    return %c0_i32_0, %c0_i32_1, %2, %c0_i32_2 : i32, i32, i32, i32
  }
  func.func @transform_1(%arg0: i32, %arg1: i32) -> (i32, i32, i32, i32) {
    %c1_i32 = arith.constant 1 : i32
    %0 = arith.muli %arg0, %c1_i32 : i32
    %1 = arith.addi %0, %arg1 : i32
    %c0_i32 = arith.constant 0 : i32
    %2 = arith.minsi %1, %c0_i32 : i32
    %c0_i32_0 = arith.constant 0 : i32
    %c0_i32_1 = arith.constant 0 : i32
    %c0_i32_2 = arith.constant 0 : i32
    %c0_i32_3 = arith.constant 0 : i32
    return %c0_i32_0, %c0_i32_1, %2, %c0_i32_2 : i32, i32, i32, i32
  }
  func.func @transform_2(%arg0: i32, %arg1: i32) -> i32 {
    %c0_i32 = arith.constant 0 : i32
    %c0_i32_0 = arith.constant 0 : i32
    return %c0_i32 : i32
  }
  func.func @transform_3(%arg0: i32, %arg1: i32) -> (i32, i32) {
    %c0_i32 = arith.constant 0 : i32
    %c0_i32_0 = arith.constant 0 : i32
    return %c0_i32, %arg0 : i32, i32
  }
  func.func @transform_4(%arg0: i32, %arg1: i32) -> (i32, i32) {
    %c0_i32 = arith.constant 0 : i32
    %c0_i32_0 = arith.constant 0 : i32
    return %c0_i32, %arg0 : i32, i32
  }
}

</mosaic_0001>

<bundles_post_ra>
// kernel: tpu_custom_call.1
= control target key start
LH: loop header
LB: loop body
LE: loop exit
PB: predicated region body
PF: predicated region fallthrough
CT: control target
= control target key end

     0   :  { %10 = vsyncpa [#allocation5], 0  ;;  %s606_s0 = inlined_call_operand.hbm [shape: f32[2,4,2,128], index: 0, kind: input, shape index: {}]   ;;  %s607_s1 = inlined_call_operand.hbm [shape: s32[2,1,2,128], index: 1, kind: input, shape index: {}]   ;;  %s608_s2 = inlined_call_operand.vmem [shape: f32[4], index: 2, kind: input, shape index: {}]   ;;  %s609_s3 = inlined_call_operand.hbm [shape: f32[1,128], index: 3, kind: output, shape index: {0}]   ;;  %s610_s4 = inlined_call_operand.hbm [shape: f32[1,128], index: 4, kind: output, shape index: {1}]  }
   0x1   :  { %11 = vsyncpa [#allocation9], 0 }
   0x2   :  { %12 = vsyncpa [#allocation7], 0 }
   0x3   :  { %13 = vsyncpa [#allocation6], 0 }
   0x4   :  { %14 = vsyncpa [#allocation13], 0  ;;  %s24_s17 = sshll.u32 %s606_s0, 4  ;;  %s433_s18 = smov [#allocation4]   ;;  %s25_s17 = int_to_ptr.hbm [resolvable:$true] %s24_s17 }
   0x5   :  { %s26_s19 = sshll.u32 %s433_s18, 4  ;;  %s42_s22 = sshll.u32 %s607_s1, 4  ;;  %s27_s19 = int_to_ptr.vmem [resolvable:$true] %s26_s19  ;;  %s43_s22 = int_to_ptr.hbm [resolvable:$true] %s42_s22 }
   0x6   :  { %s434_s23 = smov 32   ;;  %s435_s24 = smov 2  }
   0x7   :  { %32 = dma.hbm_to_vmem [thread:$0]  %s25_s17, 256, %s27_s19, [#allocation5], %s434_s23, %s434_s23, %s435_s24  }
   0x8   :  { %s436_s25 = smov [#allocation8]   ;;  %s56_s29 = sshll.u32 %s608_s2, 4  ;;  %s57_s29 = int_to_ptr.vmem [resolvable:$true] %s56_s29 }
   0x9   :  { %s44_s26 = sshll.u32 %s436_s25, 4  ;;  %s437_s0 = smov [#allocation10]   ;;  %s45_s26 = int_to_ptr.vmem [resolvable:$true] %s44_s26 }
   0xa   :  { %50 = dma.hbm_to_vmem [thread:$0]  %s43_s22, 64, %s45_s26, [#allocation9], %s434_s23, %s434_s23, %s435_s24  }
   0xb   :  { %59 = dma.vmem_to_smem %s57_s29, 16, %s437_s0, [#allocation7]  }
   0xc   :  { %423 = dma.done.wait [#allocation5], 256  }
   0xd   :  { %424 = vsyncadd [#allocation5], 4294967040 }
   0xe   :  { %425 = dma.done.wait [#allocation9], 64  }
   0xf   :  { %426 = vsyncadd [#allocation9], 4294967232 }
  0x10   :  { %427 = dma.done.wait [#allocation7], 16  }
  0x11   :  { %428 = vsyncadd [#allocation7], 4294967280 }
  0x12   :  { %72 = sfence }
  0x13   :  { %v438_v0 = vmov 0.0   ;;  %v475_v1 = vld [vmem:[#allocation4] sm:$0x3]  ;;  %v477_v2 = vld [vmem:[#allocation4 + $0x8] sm:$0x3]  ;;  %s93_s1 = sld [smem:[#allocation10]]  ;;  %v174_v6 = vlaneseq }
  0x14   :  { %83 = vst [vmem:[#allocation2] sm:$0x3] %v438_v0  ;;  %v479_v3 = vld [vmem:[#allocation8] sm:$0x3]  ;;  %v481_v4 = vld [vmem:[#allocation4 + $0x2] sm:$0x3] }
  0x15   :  { %84 = vst [vmem:[#allocation3] sm:$0x3] %v438_v0  ;;  %v483_v5 = vld [vmem:[#allocation4 + $0xa] sm:$0x3]  ;;  %v485_v7 = vld [vmem:[#allocation8 + $0x2] sm:$0x3]  ;;  %v102_v8 = vmax.f32 %v475_v1, %v481_v4 }
  0x16   :  { %v103_v9 = vmax.f32 %v477_v2, %v483_v5  ;;  %s280_s2 = sld [smem:[#allocation10 + $0x1]]  ;;  %v491_v10 = vld [vmem:[#allocation4 + $0x4] sm:$0x3]  ;;  %vm89_vm0 = vcmp.eq.s32.totalorder %v479_v3, 0  ;;  %v494_v11 = vld [vmem:[#allocation4 + $0xc] sm:$0x3] }
  0x17   :  { %s281_s30 = sld [smem:[#allocation10 + $0x2]]  ;;  %v115_v12 = vmax.f32 %v102_v8, %v491_v10  ;;  %v498_v14 = vld [vmem:[#allocation4 + $0x6] sm:$0x3]  ;;  %v500_v15 = vld [vmem:[#allocation4 + $0xe] sm:$0x3]  ;;  %vm90_vm1 = vcmp.eq.s32.totalorder %v485_v7, 0 }
  0x18   :  { %v116_v13 = vmax.f32 %v103_v9, %v494_v11  ;;  %s502_s5 = sld [smem:[#allocation10 + $0x3]]  ;;  %vm100_vm2 = vcmp.eq.s32.totalorder %v479_v3, 1  ;;  %vm101_vm3 = vcmp.eq.s32.totalorder %v485_v7, 1  ;;  %v175_v16 = vshrl.u32 %v174_v6, 7  ;;  %s439_s6 = smov [#allocation11]  }
  0x19   :  { %v94_v17 = vstv %s93_s1  ;;  %vm113_vm4 = vcmp.eq.s32.totalorder %v479_v3, 2  ;;  %v509_v18 = vmax.f32 %v115_v12, %v498_v14  ;;  %v177_v22 = vand.u32 127, %v174_v6  ;;  %s246_s7 = sshll.u32 %s439_s6, 4  ;;  %s248_s10 = sshll.u32 %s609_s3, 4  ;;  %s247_s7 = int_to_ptr.vmem [resolvable:$true] %s246_s7  ;;  %s249_s10 = int_to_ptr.hbm [resolvable:$true] %s248_s10 }
  0x1a   :  { %v512_v19 = vmax.f32 %v116_v13, %v500_v15  ;;  %v95_v20 = vsel %vm89_vm0, %v94_v17, 0.0  ;;  %v96_v21 = vsel %vm90_vm1, %v94_v17, 0.0  ;;  %v182_v23 = vmul.u32 128, %v175_v16  ;;  %s440_s12 = smov [#allocation12]   ;;  %s259_s16 = sshll.u32 %s610_s4, 4  ;;  %s260_s16 = int_to_ptr.hbm [resolvable:$true] %s259_s16 }
  0x1b   :  { %v136_v25 = vsub.f32 %v475_v1, %v509_v18  ;;  %v144_v27 = vsub.f32 %v481_v4, %v509_v18  ;;  %vm114_vm5 = vcmp.eq.s32.totalorder %v485_v7, 2  ;;  %v152_v39 = vsub.f32 %v491_v10, %v509_v18  ;;  %s257_s13 = sshll.u32 %s440_s12, 4  ;;  %s258_s13 = int_to_ptr.vmem [resolvable:$true] %s257_s13 }
  0x1c   :  { %v107_v24 = vstv %s280_s2  ;;  %v137_v26 = vsub.f32 %v477_v2, %v512_v19  ;;  %v145_v31 = vsub.f32 %v483_v5, %v512_v19  ;;  %v153_v40 = vsub.f32 %v494_v11, %v512_v19  ;;  %v204_v58 = vld [vmem:[#allocation3] sm:$0x3] }
  0x1d   :  { %v108_v28 = vsel %vm100_vm2, %v107_v24, %v95_v20  ;;  %v109_v29 = vsel %vm101_vm3, %v107_v24, %v96_v21  ;;  %v120_v30 = vstv %s281_s30  ;;  %v138_v33 = vmul.f32 1.442695, %v136_v25 }
  0x1e   :  { %v121_v32 = vsel %vm113_vm4, %v120_v30, %v108_v28  ;;  %v122_v34 = vsel %vm114_vm5, %v120_v30, %v109_v29  ;;  %v133_v35 = vstv %s502_s5  ;;  %v140_v36 = vmul.f32 1.442695, %v137_v26 }
  0x1f   :  { %v146_v37 = vmul.f32 1.442695, %v144_v27  ;;  %295 = vpow2.f32 %v138_v33  ;;  %v148_v38 = vmul.f32 1.442695, %v145_v31  ;;  %v160_v41 = vsub.f32 %v498_v14, %v509_v18 }
  0x20   :  { %297 = vpow2.f32 %v140_v36  ;;  %v161_v42 = vsub.f32 %v500_v15, %v512_v19  ;;  %v183_v43 = vadd.s32 %v182_v23, %v177_v22  ;;  %v154_v44 = vmul.f32 1.442695, %v152_v39 }
  0x21   :  { %299 = vpow2.f32 %v146_v37  ;;  %v156_v45 = vmul.f32 1.442695, %v153_v40  ;;  %vm184_vm6 = vcmp.ne.s32.totalorder %v479_v3, 4294967295  ;;  %v162_v46 = vmul.f32 1.442695, %v160_v41 }
  0x22   :  { %301 = vpow2.f32 %v148_v38  ;;  %v164_v47 = vmul.f32 1.442695, %v161_v42  ;;  %vm185_vm7 = vcmp.ne.s32.totalorder %v485_v7, 4294967295  ;;  %vm126_vm8 = vcmp.eq.s32.totalorder %v479_v3, 3 }
  0x23   :  { %303 = vpow2.f32 %v154_v44  ;;  %vm186_vm9 = vcmp.lt.s32.totalorder %v183_v43, 256  ;;  %vm127_vm10 = vcmp.eq.s32.totalorder %v485_v7, 3  ;;  %v134_v48 = vsel %vm126_vm8, %v133_v35, %v121_v32 }
  0x24   :  { %305 = vpow2.f32 %v156_v45  ;;  %vm550_vm11 = vmand %vm184_vm6, %vm186_vm9  ;;  %v135_v51 = vsel %vm127_vm10, %v133_v35, %v122_v34  ;;  %vm198_vm13 = vcmask 1041408   ;;  %v91_v20 = vsel %vm89_vm0, %v475_v1, 0.0  ;;  %v195_v34 = vld [vmem:[#allocation2] sm:$0x3] }
  0x25   :  { %v296_v50 = vpop.eup %295  ;;  %307 = vpow2.f32 %v162_v46  ;;  %vm556_vm12 = vmand %vm185_vm7, %vm186_vm9  ;;  %v205_v53 = vsel %vm550_vm11, %v134_v48, 0.0  ;;  %v92_v22 = vsel %vm90_vm1, %v477_v2, 0.0  ;;  %v104_v23 = vsel %vm100_vm2, %v481_v4, %v91_v20 }
  0x26   :  { %v298_v54 = vpop.eup %297  ;;  %309 = vpow2.f32 %v164_v47  ;;  %v206_v55 = vsel %vm556_vm12, %v135_v51, 0.0  ;;  %v207_v56 = vsel %vm198_vm13, %v205_v53, 0.0  ;;  %v105_v24 = vsel %vm101_vm3, %v483_v5, %v92_v22 }
  0x27   :  { %v300_v57 = vpop.eup %299  ;;  %v208_v59 = vsel %vm198_vm13, %v206_v55, 0.0  ;;  %v117_v25 = vsel %vm113_vm4, %v491_v10, %v104_v23  ;;  %v118_v26 = vsel %vm114_vm5, %v494_v11, %v105_v24 }
  0x28   :  { %v302_v60 = vpop.eup %301  ;;  %v150_v61 = vadd.f32 %v300_v57, %v296_v50  ;;  %v209_v62 = vadd.f32 %v208_v59, %v207_v56  ;;  %v130_v28 = vsel %vm126_vm8, %v498_v14, %v117_v25  ;;  %v131_v5 = vsel %vm127_vm10, %v500_v15, %v118_v26 }
  0x29   :  { %v304_v63 = vpop.eup %303  ;;  %v151_v0 = vadd.f32 %v302_v60, %v298_v54 }
  0x2a   :  { %v306_v6 = vpop.eup %305  ;;  %v158_v8 = vadd.f32 %v304_v63, %v150_v61  ;;  %v210_v9 = vadd.f32 %v209_v62, %v204_v58 }
  0x2b   :  { %v308_v12 = vpop.eup %307  ;;  %v159_v13 = vadd.f32 %v306_v6, %v151_v0 }
  0x2c   :  { %v310_v16 = vpop.eup %309  ;;  %v166_v17 = vadd.f32 %v308_v12, %v158_v8  ;;  %211 = vst [vmem:[#allocation3] sm:$0x3] %v210_v9 }
  0x2d   :  { %v167_v21 = vadd.f32 %v310_v16, %v159_v13 }
  0x2e   :  { %311 = vlog2.f32 %v166_v17 }
  0x2f   :  { %313 = vlog2.f32 %v167_v21 }
  0x33   :  { %v228_v36 = vld [vmem:[#allocation3] sm:$0x3] }
  0x34   :  { %v312_v1 = vpop.eup %311  ;;  %v229_v37 = vsel %vm198_vm13, %v228_v36, 0.0 }
  0x35   :  { %v314_v2 = vpop.eup %313  ;;  %v169_v27 = vmul.f32 0.6931472, %v312_v1 }
  0x36   :  { %v171_v4 = vmul.f32 0.6931472, %v314_v2 }
  0x37   :  { %v172_v29 = vadd.f32 %v169_v27, %v509_v18 }
  0x38   :  { %v173_v10 = vadd.f32 %v171_v4, %v512_v19 }
  0x39   :  { %v191_v30 = vsub.f32 %v172_v29, %v130_v28 }
  0x3a   :  { %v192_v31 = vsub.f32 %v173_v10, %v131_v5 }
  0x3b   :  { %v193_v32 = vmul.f32 %v191_v30, %v134_v48 }
  0x3c   :  { %v194_v33 = vmul.f32 %v192_v31, %v135_v51 }
  0x3d   :  { %v196_v11 = vsel %vm550_vm11, %v193_v32, 0.0 }
  0x3e   :  { %v197_v3 = vsel %vm556_vm12, %v194_v33, 0.0  ;;  %v199_v14 = vsel %vm198_vm13, %v196_v11, 0.0 }
  0x3f   :  { %v200_v7 = vsel %vm198_vm13, %v197_v3, 0.0 }
  0x40   :  { %v201_v15 = vadd.f32 %v200_v7, %v199_v14 }
  0x42   :  { %v202_v35 = vadd.f32 %v201_v15, %v195_v34 }
  0x44   :  { %203 = vst [vmem:[#allocation2] sm:$0x3] %v202_v35 }
  0x4b   :  { %v215_v18 = vld [vmem:[#allocation2] sm:$0x3] }
  0x4c   :  { %v216_v19 = vsel %vm198_vm13, %v215_v18, 0.0 }
  0x4d   :  { %217 = vadd.xlane.f32.xlu0 %v216_v19 }
  0x55   :  { %230 = vadd.xlane.f32.xlu0 %v229_v37 }
  0xc0   :  { %v218_v38 = vpop.xlane.xlu0 %217 }
  0xc1   :  { %v219_v39 = vrot.slane %v218_v38, 4 }
  0xc3   :  { %v220_v40 = vadd.f32 %v219_v39, %v218_v38 }
  0xc5   :  { %v221_v41 = vrot.slane %v220_v40, 2 }
  0xc7   :  { %v222_v42 = vadd.f32 %v221_v41, %v220_v40 }
  0xc8   :  { %v231_v43 = vpop.xlane.xlu0 %230 }
  0xc9   :  { %v232_v44 = vrot.slane %v231_v43, 4  ;;  %v223_v45 = vrot.slane %v222_v42, 1 }
  0xcb   :  { %v233_v46 = vadd.f32 %v232_v44, %v231_v43  ;;  %v224_v47 = vadd.f32 %v223_v45, %v222_v42 }
  0xcd   :  { %v234_v48 = vrot.slane %v233_v46, 2  ;;  %283 = vpush %v224_v47 }
  0xcf   :  { %v235_v49 = vadd.f32 %v234_v48, %v233_v46 }
  0xd1   :  { %v236_v50 = vrot.slane %v235_v49, 1 }
  0xd3   :  { %v237_v51 = vadd.f32 %v236_v50, %v235_v49 }
  0xd5   :  { %285 = vpush %v237_v51 }
  0xfe   :  { %s284_s11 = spop %283 }
  0xff   :  { %v226_v52 = vstv %s284_s11 }
 0x100   :  { %227 = vst [vmem:[#allocation11] sm:$0x1] %v226_v52 }
 0x101   :  { %251 = dma.vmem_to_hbm [thread:$0]  %s247_s7, 16, %s249_s10, [#allocation6]  }
 0x106   :  { %s286_s17 = spop %285 }
 0x107   :  { %v239_v53 = vstv %s286_s17 }
 0x108   :  { %240 = vst [vmem:[#allocation12] sm:$0x1] %v239_v53 }
 0x109   :  { %262 = dma.vmem_to_hbm [thread:$0]  %s258_s13, 16, %s260_s16, [#allocation13]  }
 0x10a   :  { %429 = dma.done.wait [#allocation6], 16  }
 0x10b   :  { %430 = vsyncadd [#allocation6], 4294967280 }
 0x10c   :  { %431 = dma.done.wait [#allocation13], 16  }
 0x10d   :  { %432 = vsyncadd [#allocation13], 4294967280 }
 0x10e   :  { %271 = vsyncpa [#allocation5], 1 }
 0x10f   :  { %272 = vsyncpa [#allocation9], 1 }
 0x110   :  { %273 = vsyncpa [#allocation6], 1 }
 0x111   :  { %274 = vsyncpa [#allocation13], 1 }
 0x112   :  { %275 = vsyncpa [#allocation7], 1 }

</bundles_post_ra>
